<compile_context>
chip_gen: v7x
topology: tpu7x:2x2x1
jax: 0.10.0
libtpu: 0.0.40
codegen_flags: <defaults>
</compile_context>

<pallas_src>
import jax
import jax.numpy as jnp
from jax.experimental import pallas as pl
from jax.experimental.pallas import tpu as pltpu

NEG_SLOPE = 0.01              # nn.LeakyReLU default negative slope
LANE = 128                    # TPU lane width: pad feature dims to this
TILE_N = 128                  # dst-node tile; ~512 fits v5e/v6e (128 MiB VMEM), ~256 on v7x (64 MiB)
VMEM_LIMIT = 48 * 1024 * 1024 # leaves headroom even on v7x's 64 MiB/TC


def _leaky(h):
    return jnp.where(h >= 0, h, NEG_SLOPE * h)


def _round_up(x, m):
    return ((x + m - 1) // m) * m


def _pad2(a, rows, cols):
    return jnp.pad(a, ((0, rows - a.shape[0]), (0, cols - a.shape[1])))


# ----------------------------------------------------------------------------
# Kernels
# ----------------------------------------------------------------------------
def encoder_kernel(x_ref, w_ref, b_ref, out_ref):
    """h = LeakyReLU(x @ W_fe + b_fe) for one tile of nodes (bf16 MXU, f32 acc)."""
    h = jnp.dot(x_ref[...], w_ref[...], preferred_element_type=jnp.float32)
    out_ref[...] = _leaky(h + b_ref[...]).astype(out_ref.dtype)


def make_rgcn_kernel(num_rel, tile_n, with_classifier):
    """RGCN layer (+ LeakyReLU, optionally + fused classifier) for one dst-node tile.

    Grid axis 0 (i) = destination-node tile ("parallel").  The full (padded)
    source activation h is VMEM-resident; the src reduction is a single deep-K
    MXU dot per tile.  Mean normalization uses exact f32 1/deg in the epilogue.
    """
    def kernel(*refs):
        if with_classifier:
            (adj_ref, h_ref, invdeg_ref, wroot_ref, wrel_ref, b_ref,
             wcls_ref, bcls_ref, out_ref) = refs
        else:
            (adj_ref, h_ref, invdeg_ref, wroot_ref, wrel_ref, b_ref,
             out_ref) = refs

        n_src = h_ref.shape[0]                                   # = n_pad
        i = pl.program_id(0)
        row0 = pl.multiple_of(i * tile_n, tile_n)
        h_dst = h_ref[pl.ds(row0, tile_n), :]                    # dst rows, bf16 (resident h)

        # Root term: h_i @ W_root + b   (f32 accumulation)
        acc = jnp.dot(h_dst, wroot_ref[...],
                      preferred_element_type=jnp.float32) + b_ref[...]

        # One deep-K aggregation dot for all relations:
        #   (R*tile_n, n_pad) @ (n_pad, Hp) -> (R*tile_n, Hp) f32
        adj = adj_ref[...].reshape(num_rel * tile_n, n_src)      # bf16 edge counts (exact)
        agg = jnp.dot(adj, h_ref[...], preferred_element_type=jnp.float32)

        for r in range(num_rel):                                 # R is small -> static unroll
            agg_r = agg[r * tile_n:(r + 1) * tile_n] * invdeg_ref[r]   # exact f32 mean
            acc += jnp.dot(agg_r.astype(jnp.bfloat16), wrel_ref[r],
                           preferred_element_type=jnp.float32)

        h_out = _leaky(acc)
        if with_classifier:
            out_ref[...] = (jnp.dot(h_out.astype(jnp.bfloat16), wcls_ref[...],
                                    preferred_element_type=jnp.float32)
                            + bcls_ref[...])
        else:
            out_ref[...] = h_out.astype(out_ref.dtype)           # bf16 intermediate
    return kernel


# ----------------------------------------------------------------------------
# Graph preprocessing (plain JAX glue)
# ----------------------------------------------------------------------------
def build_relation_counts(edge_index, edge_type, num_nodes, num_relations):
    """counts[r, dst, src] = multiplicity of (src -> dst) edges of relation r;
    inv_deg[r, dst] = 1 / max(#incoming relation-r edges of dst, 1)."""
    src, dst = edge_index[0], edge_index[1]
    counts = jnp.zeros((num_relations, num_nodes, num_nodes), jnp.float32)
    counts = counts.at[edge_type, dst, src].add(1.0)
    deg = counts.sum(axis=-1)
    inv_deg = 1.0 / jnp.maximum(deg, 1.0)
    return counts, inv_deg
# TODO(synk): at real MGTAB node counts, replace the dense O(R*N^2) adjacency with a
# CSR/segment layout + scalar-prefetched gather (paged-attention-style manual DMA).


# ----------------------------------------------------------------------------
# Forward wrapper
# ----------------------------------------------------------------------------
def botrgcn_forward(x, edge_index, edge_type, params, num_relations, tile_n=TILE_N):
    n, d = x.shape
    hidden = params["w_fe"].shape[1]
    out_dim = params["w_cls"].shape[1]
    hp = _round_up(hidden, LANE)
    dp = _round_up(d, LANE)
    cp = _round_up(out_dim, LANE)
    n_pad = _round_up(n, tile_n)
    bf16 = jnp.bfloat16

    # --- padded, dtype-cast operands -----------------------------------------
    counts, inv_deg = build_relation_counts(edge_index, edge_type, n, num_relations)
    # bf16 stores small integer counts exactly; normalization stays f32 in-kernel.
    adj = jnp.pad(counts, ((0, 0), (0, n_pad - n), (0, n_pad - n))).astype(bf16)
    inv_deg_p = jnp.pad(inv_deg, ((0, 0), (0, n_pad - n)))[..., None]   # (R, n_pad, 1) f32

    x_p = _pad2(x, n_pad, dp).astype(bf16)
    w_fe = _pad2(params["w_fe"], dp, hp).astype(bf16)
    b_fe = _pad2(params["b_fe"], 1, hp)

    def pad_rel(w_rel):
        return jnp.stack([_pad2(w_rel[r], hp, hp)
                          for r in range(num_relations)]).astype(bf16)   # (R, Hp, Hp)

    w1_root = _pad2(params["w1_root"], hp, hp).astype(bf16)
    w1_rel = pad_rel(params["w1_rel"])
    b1 = _pad2(params["b1"], 1, hp)
    w2_root = _pad2(params["w2_root"], hp, hp).astype(bf16)
    w2_rel = pad_rel(params["w2_rel"])
    b2 = _pad2(params["b2"], 1, hp)
    w_cls = _pad2(params["w_cls"], hp, cp).astype(bf16)
    b_cls = _pad2(params["b_cls"], 1, cp)

    n_tiles = n_pad // tile_n
    cparams = pltpu.CompilerParams(dimension_semantics=("parallel",),
                                   vmem_limit_bytes=VMEM_LIMIT)

    # --- feature encoder ------------------------------------------------------
    h = pl.pallas_call(
        encoder_kernel,
        out_shape=jax.ShapeDtypeStruct((n_pad, hp), bf16),
        grid_spec=pltpu.PrefetchScalarGridSpec(
            num_scalar_prefetch=0, grid=(n_tiles,),
            in_specs=[pl.BlockSpec((tile_n, dp), lambda i: (i, 0)),
                      pl.BlockSpec((dp, hp), lambda i: (0, 0)),
                      pl.BlockSpec((1, hp), lambda i: (0, 0))],
            out_specs=pl.BlockSpec((tile_n, hp), lambda i: (i, 0))),
        compiler_params=cparams,
    )(x_p, w_fe, b_fe)

    # --- RGCN layers (layer 2 fuses the classifier) ---------------------------
    def rgcn_layer(h_in, w_root, w_rel, b, w_c=None, b_c=None):
        with_cls = w_c is not None
        in_specs = [
            # full-width (src) adjacency rows for this dst tile -> contiguous DMA
            pl.BlockSpec((num_relations, tile_n, n_pad), lambda i: (0, i, 0)),
            # full h kept VMEM-resident across the grid (constant block index)
            pl.BlockSpec((n_pad, hp), lambda i: (0, 0)),
            pl.BlockSpec((num_relations, tile_n, 1), lambda i: (0, i, 0)),
            pl.BlockSpec((hp, hp), lambda i: (0, 0)),
            pl.BlockSpec((num_relations, hp, hp), lambda i: (0, 0, 0)),
            pl.BlockSpec((1, hp), lambda i: (0, 0)),
        ]
        args = [adj, h_in, inv_deg_p, w_root, w_rel, b]
        out_w = cp if with_cls else hp
        out_dt = jnp.float32 if with_cls else bf16
        if with_cls:
            in_specs += [pl.BlockSpec((hp, cp), lambda i: (0, 0)),
                         pl.BlockSpec((1, cp), lambda i: (0, 0))]
            args += [w_c, b_c]
        return pl.pallas_call(
            make_rgcn_kernel(num_relations, tile_n, with_cls),
            out_shape=jax.ShapeDtypeStruct((n_pad, out_w), out_dt),
            grid_spec=pltpu.PrefetchScalarGridSpec(
                num_scalar_prefetch=0, grid=(n_tiles,),
                in_specs=in_specs,
                out_specs=pl.BlockSpec((tile_n, out_w), lambda i: (i, 0))),
            compiler_params=cparams,
        )(*args)

    h = rgcn_layer(h, w1_root, w1_rel, b1)                 # LeakyReLU(RGCN1(.)); dropout = identity
    out = rgcn_layer(h, w2_root, w2_rel, b2, w_cls, b_cls) # classifier(LeakyReLU(RGCN2(.)))
    return out[:n, :out_dim]


# ----------------------------------------------------------------------------
# Params / reference
# ----------------------------------------------------------------------------
def init_params(key, input_dim, hidden_dim, num_relations):
    ks = jax.random.split(key, 8)
    scale = 0.1
    return {
        "w_fe":    scale * jax.random.normal(ks[0], (input_dim, hidden_dim), jnp.float32),
        "b_fe":    scale * jax.random.normal(ks[1], (1, hidden_dim), jnp.float32),
        "w1_root": scale * jax.random.normal(ks[2], (hidden_dim, hidden_dim), jnp.float32),
        "w1_rel":  scale * jax.random.normal(ks[3], (num_relations, hidden_dim, hidden_dim), jnp.float32),
        "b1":      jnp.zeros((1, hidden_dim), jnp.float32),
        "w2_root": scale * jax.random.normal(ks[4], (hidden_dim, hidden_dim), jnp.float32),
        "w2_rel":  scale * jax.random.normal(ks[5], (num_relations, hidden_dim, hidden_dim), jnp.float32),
        "b2":      jnp.zeros((1, hidden_dim), jnp.float32),
        "w_cls":   scale * jax.random.normal(ks[6], (hidden_dim, hidden_dim), jnp.float32),
        "b_cls":   scale * jax.random.normal(ks[7], (1, hidden_dim), jnp.float32),
    }


def reference_forward(x, edge_index, edge_type, params, num_relations):
    """Pure-JAX f32 reference (same math) for a sanity check."""
    counts, inv_deg = build_relation_counts(edge_index, edge_type, x.shape[0], num_relations)
    adj = counts * inv_deg[..., None]                      # row-normalized (mean) adjacency
    h = _leaky(x @ params["w_fe"] + params["b_fe"])

    def rgcn(h, w_root, w_rel, b):
        out = h @ w_root + b
        for r in range(num_relations):
            out = out + (adj[r] @ h) @ w_rel[r]
        return out

    h = _leaky(rgcn(h, params["w1_root"], params["w1_rel"], params["b1"]))
    h = _leaky(rgcn(h, params["w2_root"], params["w2_rel"], params["b2"]))
    return h @ params["w_cls"] + params["b_cls"]


if __name__ == "__main__":
    # Small synthetic problem consistent with the module's forward; N > TILE_N so the
    # multi-tile dst grid is actually exercised.
    N = 200          # nodes (padded to 256 -> 2 dst tiles of 128)
    INPUT_DIM = 16   # args.input_dim
    HIDDEN = 32      # args.hidden_dim
    R = 2            # args.num_relations
    E = 600          # number of edges

    key = jax.random.PRNGKey(0)
    k_x, k_src, k_dst, k_rel, k_p = jax.random.split(key, 5)

    x = jax.random.normal(k_x, (N, INPUT_DIM), jnp.float32)
    edge_index = jnp.stack([
        jax.random.randint(k_src, (E,), 0, N),
        jax.random.randint(k_dst, (E,), 0, N),
    ], axis=0)                                   # [2, E]  (row0 = src, row1 = dst)
    edge_type = jax.random.randint(k_rel, (E,), 0, R)

    params = init_params(k_p, INPUT_DIM, HIDDEN, R)

    out = botrgcn_forward(x, edge_index, edge_type, params, R)
    out = jax.block_until_ready(out)

    ref = reference_forward(x, edge_index, edge_type, params, R)
    assert out.shape == (N, params["w_cls"].shape[1])
    # bf16 MXU feed with f32 accumulation (adjacency counts + 1/deg are exact) ->
    # compare against the f32 reference with a correspondingly loose tolerance.
    max_err = float(jnp.max(jnp.abs(out - ref)))
    assert jnp.allclose(out, ref, atol=2e-2, rtol=2e-2), max_err

    # TODO(synk): training-time edge_mask (Bernoulli edge dropout) and F.dropout are
    # randomized training-only ops; eval-mode forward (identity) is implemented here.
    print("KERNEL_OK")
</pallas_src>

<mosaic_0001>
module attributes {stable_mosaic.version = 11 : i64} {
  func.func @encoder_kernel(%arg0: i32, %arg1: memref<128x128xbf16, #tpu.memory_space<vmem>>, %arg2: memref<128x128xbf16, #tpu.memory_space<vmem>>, %arg3: memref<1x128xf32, #tpu.memory_space<vmem>>, %arg4: memref<128x128xbf16, #tpu.memory_space<vmem>>) attributes {dimension_semantics = [#tpu.dimension_semantics<parallel>], iteration_bounds = array<i64: 2>, scalar_prefetch = 0 : i64, scratch_operands = 0 : i64, tpu.core_type = #tpu.core_type<tc>, window_params = [{transform_indices = @transform_0, window_bounds = array<i64: 128, 128>}, {pipeline_mode = #tpu.pipeline_mode<synchronous>, transform_indices = @transform_1, window_bounds = array<i64: 128, 128>}, {pipeline_mode = #tpu.pipeline_mode<synchronous>, transform_indices = @transform_2, window_bounds = array<i64: 1, 128>}, {transform_indices = @transform_3, window_bounds = array<i64: 128, 128>}]} {
    %c0 = arith.constant 0 : index
    %c0_0 = arith.constant 0 : index
    %0 = vector.load %arg1[%c0, %c0_0] : memref<128x128xbf16, #tpu.memory_space<vmem>>, vector<128x128xbf16>
    %c0_1 = arith.constant 0 : index
    %c0_2 = arith.constant 0 : index
    %1 = vector.load %arg2[%c0_1, %c0_2] : memref<128x128xbf16, #tpu.memory_space<vmem>>, vector<128x128xbf16>
    %cst = arith.constant dense<0.000000e+00> : vector<128x128xf32>
    %2 = tpu.matmul %0, %1, %cst {dimension_numbers = #tpu.dot_dimension_numbers<[1], [0], [0], [1], [0, 0, 1, 1], [], []>} : vector<128x128xbf16>, vector<128x128xbf16>, vector<128x128xf32> -> vector<128x128xf32>
    %c0_3 = arith.constant 0 : index
    %c0_4 = arith.constant 0 : index
    %3 = vector.load %arg3[%c0_3, %c0_4] : memref<1x128xf32, #tpu.memory_space<vmem>>, vector<1x128xf32>
    %4 = vector.broadcast %3 : vector<1x128xf32> to vector<128x128xf32>
    %5 = arith.addf %2, %4 : vector<128x128xf32>
    %cst_5 = arith.constant 0.000000e+00 : f32
    %6 = vector.broadcast %cst_5 : f32 to vector<128x128xf32>
    %7 = arith.cmpf oge, %5, %6 : vector<128x128xf32>
    %cst_6 = arith.constant 0.00999999977 : f32
    %8 = vector.broadcast %cst_6 : f32 to vector<128x128xf32>
    %9 = arith.mulf %8, %5 : vector<128x128xf32>
    %10 = arith.select %7, %5, %9 : vector<128x128xi1>, vector<128x128xf32>
    %11 = arith.truncf %10 : vector<128x128xf32> to vector<128x128xbf16>
    %c0_7 = arith.constant 0 : index
    %c0_8 = arith.constant 0 : index
    %12 = vector.load %arg4[%c0_7, %c0_8] : memref<128x128xbf16, #tpu.memory_space<vmem>>, vector<128x128xbf16>
    tpu.vector_store %arg4[%c0_7, %c0_8], %11 {strides = array<i32>} : memref<128x128xbf16, #tpu.memory_space<vmem>>, vector<128x128xbf16>,
    return
  }
  func.func @transform_0(%arg0: i32) -> (i32, i32) {
    %c0_i32 = arith.constant 0 : i32
    %c0_i32_0 = arith.constant 0 : i32
    return %arg0, %c0_i32 : i32, i32
  }
  func.func @transform_1(%arg0: i32) -> (i32, i32) {
    %c0_i32 = arith.constant 0 : i32
    %c0_i32_0 = arith.constant 0 : i32
    %c0_i32_1 = arith.constant 0 : i32
    return %c0_i32, %c0_i32_0 : i32, i32
  }
  func.func @transform_2(%arg0: i32) -> (i32, i32) {
    %c0_i32 = arith.constant 0 : i32
    %c0_i32_0 = arith.constant 0 : i32
    %c0_i32_1 = arith.constant 0 : i32
    return %c0_i32, %c0_i32_0 : i32, i32
  }
  func.func @transform_3(%arg0: i32) -> (i32, i32) {
    %c0_i32 = arith.constant 0 : i32
    %c0_i32_0 = arith.constant 0 : i32
    return %arg0, %c0_i32 : i32, i32
  }
}

</mosaic_0001>

<bundles_post_ra>
// kernel: tpu_custom_call.1
= control target key start
LH: loop header
LB: loop body
LE: loop exit
PB: predicated region body
PF: predicated region fallthrough
CT: control target
= control target key end

     0   :  { %8 = vsyncpa [#allocation3], 0  ;;  %s1333_s0 = inlined_call_operand.hbm [shape: bf16[256,128], index: 0, kind: input, shape index: {}]   ;;  %s1334_s1 = inlined_call_operand.hbm [shape: bf16[128,128], index: 1, kind: input, shape index: {}]   ;;  %s1335_s2 = inlined_call_operand.vmem [shape: f32[1,128], index: 2, kind: input, shape index: {}]   ;;  %s1336_s3 = inlined_call_operand.hbm [shape: bf16[256,128], index: 3, kind: output, shape index: {}]  }
   0x1   :  { %10 = vsyncpa [#allocation3 + $0x1], 0 }
   0x2   :  { %11 = vsyncpa [#allocation6], 0 }
   0x3   :  { %12 = vsyncpa [#allocation4], 0 }
   0x4   :  { %14 = vsyncpa [#allocation4 + $0x1], 0  ;;  %s1076_s12 = smov 0   ;;  %s1078_s13 = smov 0  }
   0x5   :  { %s1080_s14 = smov 0   ;;  %s1082_s15 = smov 0  }
   0x6 LB: > { %s1097_s16 = sadd.s32 4294967295, %s1047_s15   ;;  %s664_s17 = sadd.s32 4294967294, %s1047_s15   ;;  %s1047_s15 = sphi %s1082_s15, %s1356_s15   ;;  %s1043_s14 = sphi %s1080_s14, %s1355_s14   ;;  %s1039_s13 = sphi %s1078_s13, %s1354_s13   ;;  %s1035_s12 = sphi %s1076_s12, %s1353_s12  }
   0x7   : > { %p40_p0 = scmp.ne.s32.totalorder %s1039_s13, %s1035_s12  ;;  %p1337_p1 = scmp.eq.s32.totalorder %s1097_s16, 0 }
   0x8   : > { %p112_p3 = scmp.eq.s32.totalorder %s664_s17, 1  ;;  %p665_p5 = scmp.ge.s32.totalorder %s1047_s15, 1 }
   0x9   : > { %p1106_p4 = por %p1337_p1, %p40_p0  ;;  %p119_p7 = scmp.lt.s32.totalorder %s1047_s15, 3 }
   0xa   : > { %p1111_p6 = por %p112_p3, %p40_p0  ;;  %s1049_s21 = smov [#allocation5]  }
   0xb   : > { %s1340_s18 = scalar_select %p1106_p4, 1, 0 }
   0xc   : > { %s1341_s19 = scalar_select %p1111_p6, 1, 0 }
   0xd   : > { %p1116_p8 = pnand %p665_p5, %p119_p7  ;;  %s131_s22 = sshll.u32 %s1049_s21, 4  ;;  %s1120_s22 = int_to_ptr.vmem [resolvable:$true] %s131_s22 }
   0xe   : > { %s1132_s24 = sadd.s32 1, %s1047_s15   ;;  %s27_s25 = sadd.s32 1, %s1043_s14 }
   0xf   : > { %s1342_s20 = scalar_select %p1116_p8, 1, 0 }
  0x10   : > { %p850_p9 = pneg %p1116_p8  ;;  %s24_s26 = ssub.s32 %s1047_s15, %s1132_s24 }
  0x11   : > { %s919_s29 = scalar_lea.hbm %s1334_s1, 1024 }
  0x12   : > { %p1127_p11 = pnand %p850_p9, %p1337_p1  ;;  %p920_p12 = scmp.ne.s32.totalorder %s1334_s1, %s919_s29 }
  0x13   : > { %p926_p5 = scmp.lt.u32.totalorder %s919_s29, %s1334_s1 }
  0x14   : > { %p921_p13 = pneg %p1127_p11 }
  0x16   : > { %p922_p0 = pnand %p921_p13, %p920_p12 }
  0x18   : > { %p923_p3 = pneg %p922_p0 }
  0x1a   : > { %p928_p7 = pnand %p926_p5, %p923_p3 }
  0x1c   : > { %931 = shalt.err (!%p928_p7)
}
  0x1d   : > { %s932_s7 = scalar_lea.vmem %s1120_s22, 1024  ;;  %p940_p2 = scmp.lt.s32.totalorder %s1120_s22, %s1120_s22 }
  0x1e   : > { %p933_p9 = scmp.ne.s32.totalorder %s1120_s22, %s932_s7  ;;  %p941_p6 = scmp.lt.s32.totalorder %s932_s7, %s932_s7 }
  0x20   : > { %p935_p10 = pnand %p933_p9, %p921_p13  ;;  %p942_p4 = por %p941_p6, %p940_p2 }
  0x22   : > { %p936_p1 = pneg %p935_p10 }
  0x24   : > { %p943_p8 = pnand %p942_p4, %p936_p1 }
  0x26   : > { %946 = shalt.err (!%p943_p8)
}
  0x27   : > { %s1050_s8 = smov 64   ;;  %s1051_s9 = smov 4  }
  0x28   : > { %853 = dma.hbm_to_vmem [thread:$0]  (!%p1127_p11), %s1334_s1, 1024, %s1120_s22, [#allocation6], %s1050_s8, %s1050_s8, %s1051_s9  }
  0x29   : > { %p25_p1 = scmp.eq.s32.totalorder %s24_s26, 0  ;;  %p34_p2 = scmp.ne.s32.totalorder %s1043_s14, %s1039_s13 }
  0x2a   : > { %p35_p4 = scmp.eq.s32.totalorder %s1047_s15, 0  ;;  %p863_p6 = scmp.lt.s32.totalorder %s1047_s15, 2 }
  0x2b   : > { %s1166_s17 = scalar_select %p25_p1, %s1043_s14, %s27_s25  }
  0x2c   : > { %p36_p8 = por %p35_p4, %p34_p2  ;;  %p1344_p10 = scmp.eq.s32.totalorder %s1097_s16, 1 }
  0x2d   : > { %s148_s23 = sand.u32 1, %s1043_s14   ;;  %s713_s27 = sshll.u32 %s1047_s15, 10 }
  0x2e   : > { %p1170_p12 = por %p1344_p10, %p34_p2  ;;  %s668_s28 = sshll.u32 %s148_s23, 6 }
  0x2f   : > { %s1179_s4 = scalar_lea.hbm %s1333_s0, %s713_s27  ;;  %s152_s22 = scalar_lea.vmem [#allocation2], %s668_s28 }
  0x30   : > { %s159_s25 = sshll.u32 %s152_s22, 4  ;;  %p1181_p11 = pnand %p863_p6, %p36_p8  ;;  %s1185_s25 = int_to_ptr.vmem [resolvable:$true] %s159_s25 }
  0x31   : > { %s1187_s5 = scalar_lea.sflag [#allocation3], %s148_s23  ;;  %s947_s6 = scalar_lea.hbm %s1179_s4, 1024 }
  0x32   : > { %p948_p13 = scmp.ne.s32.totalorder %s1179_s4, %s947_s6  ;;  %p949_p0 = pneg %p1181_p11 }
  0x33   : > { %s952_s11 = scalar_lea.hbm %s1333_s0, 2048  ;;  %p953_p7 = scmp.lt.u32.totalorder %s1179_s4, %s1333_s0 }
  0x34   : > { %p950_p3 = pnand %p949_p0, %p948_p13  ;;  %p954_p9 = scmp.lt.u32.totalorder %s952_s11, %s947_s6 }
  0x35   : > { %p956_p2 = scmp.lt.u32.totalorder %s947_s6, %s1179_s4 }
  0x36   : > { %p951_p5 = pneg %p950_p3  ;;  %p955_p1 = por %p954_p9, %p953_p7 }
  0x38   : > { %p957_p4 = por %p956_p2, %p955_p1 }
  0x3a   : > { %p958_p6 = pnand %p957_p4, %p951_p5 }
  0x3c   : > { %961 = shalt.err (!%p958_p6)
}
  0x3d   : > { %s962_s23 = scalar_lea.vmem %s1185_s25, 1024  ;;  %s1052_s29 = smov [#allocation2]  }
  0x3e   : > { %p963_p8 = scmp.ne.s32.totalorder %s1185_s25, %s962_s23  ;;  %s967_s30 = sshll.u32 %s1052_s29, 4  ;;  %s968_s30 = int_to_ptr.vmem [resolvable:$false] %s967_s30 }
  0x3f   : > { %s969_s22 = scalar_lea.vmem %s968_s30, 2048  ;;  %p970_p3 = scmp.lt.s32.totalorder %s1185_s25, %s968_s30 }
  0x40   : > { %p965_p10 = pnand %p963_p8, %p949_p0  ;;  %p971_p7 = scmp.lt.s32.totalorder %s969_s22, %s962_s23 }
  0x42   : > { %p966_p13 = pneg %p965_p10  ;;  %p972_p9 = por %p971_p7, %p970_p3 }
  0x44   : > { %p973_p1 = pnand %p972_p9, %p966_p13 }
  0x46   : > { %976 = shalt.err (!%p973_p1)
}
  0x47   : > { %857 = dma.hbm_to_vmem [thread:$0]  (!%p1181_p11), %s1179_s4, 1024, %s1185_s25, %s1187_s5, %s1050_s8, %s1050_s8, %s1051_s9  }
  0x48   : > { %p1347_p0 = scmp.ne.s32.totalorder %s1342_s20, 0 }
  0x49   : > { %s1221_s6 = sand.u32 (!%p1347_p0), 1, %s1039_s13   ;;  %p1348_p5 = scmp.ne.s32.totalorder (!%p1347_p0), %s1340_s18, 0 }
  0x4a   : > { %171 = sbr.rel (%p1347_p0) target bundleno = 368 (0x170), region = 32  ;;  %s672_s7 = sshll.u32 (!%p1347_p0), %s1221_s6, 6 }
  0x4b   : > { %s174_s10 = scalar_lea.sflag (!%p1347_p0), [#allocation3], %s1221_s6  ;;  %s1227_s26 = scalar_lea.vmem (!%p1347_p0), [#allocation2], %s672_s7 }
  0x51   : > { %1022 = dma.done.wait (%p1348_p5), %s174_s10, 1024  }
  0x52   : > { %1024 = vsyncadd (%p1348_p5), %s174_s10, 4294966272  ;;  %p1349_p11 = scmp.eq.s32.totalorder %s1097_s16, 0 }
  0x54   : > { %1026 = dma.done.wait (%p1349_p11), [#allocation6], 1024   ;;  %p1350_p2 = pmov %p1349_p11 }
  0x55   : > { %v903_v0 = vld [vmem:[#allocation5] sm:$0xff]   ;;  %v904_v1 = vld [vmem:[#allocation5 + $0x8] sm:$0xff]   ;;  %v905_v2 = vld [vmem:[#allocation5 + $0x10] sm:$0xff]   ;;  %s1264_s8 = scalar_lea.vmem [#allocation7], %s672_s7  ;;  %s730_s9 = sshll.u32 %s1097_s16, 10 }
  0x56   : > { %1028 = vsyncadd (%p1350_p2), [#allocation6], 4294966272  ;;  %794 = vmatprep.subr.bf16.mxu0 %v903_v0  ;;  %826 = vmatprep.subr.bf16.mxu1 %v903_v0  ;;  %v906_v3 = vld [vmem:[#allocation5 + $0x18] sm:$0xff]   ;;  %v911_v4 = vld [vmem:[%s1227_s26] sm:$0xff]   ;;  %s581_s4 = sshll.u32 %s1264_s8, 4  ;;  %s1285_s11 = scalar_lea.hbm %s1336_s3, %s730_s9  ;;  %s1287_s4 = int_to_ptr.vmem [resolvable:$true] %s581_s4 }
  0x57   : > { %795 = vmatpush3.bf16.msra.mxu0 %v903_v0  ;;  %834 = vmatpush3.bf16.msra.mxu1 %v903_v0  ;;  %v912_v5 = vld [vmem:[%s1227_s26 + $0x20] sm:$0xff]   ;;  %v908_v7 = vld [vmem:[#allocation5 + $0x28] sm:$0xff]   ;;  %v909_v8 = vld [vmem:[#allocation5 + $0x30] sm:$0xff]   ;;  %s568_s16 = scalar_lea.sflag [#allocation4], %s1221_s6  ;;  %s977_s27 = scalar_lea.vmem %s1287_s4, 1024 }
  0x58   : > { %796 = vmatprep.subr.bf16.mxu0 %v904_v1  ;;  %827 = vmatprep.subr.bf16.mxu1 %v904_v1  ;;  %v907_v6 = vld [vmem:[#allocation5 + $0x20] sm:$0xff]   ;;  %v910_v9 = vld [vmem:[#allocation5 + $0x38] sm:$0xff]   ;;  %v913_v10 = vld [vmem:[%s1227_s26 + $0x8] sm:$0xff]   ;;  %p978_p4 = scmp.ne.s32.totalorder %s1287_s4, %s977_s27  ;;  %s1053_s28 = smov [#allocation7]  }
  0x59   : > { %810 = vmatprep.mubr.bf16.mxu0 %v911_v4  ;;  %818 = vmatprep.mubr.bf16.mxu1 %v912_v5  ;;  %v914_v11 = vld [vmem:[%s1227_s26 + $0x28] sm:$0xff]   ;;  %v915_v12 = vld [vmem:[%s1227_s26 + $0x10] sm:$0xff]   ;;  %v917_v14 = vld [vmem:[%s1227_s26 + $0x18] sm:$0xff]   ;;  %s981_s23 = sshll.u32 %s1053_s28, 4  ;;  %s982_s23 = int_to_ptr.vmem [resolvable:$false] %s981_s23 }
  0x5a   : > { %v916_v13 = vld [vmem:[%s1227_s26 + $0x30] sm:$0xff]   ;;  %v918_v15 = vld [vmem:[%s1227_s26 + $0x38] sm:$0xff]   ;;  %v1248_v16 = vld [vmem:[%s1335_s2] ss:$0 sm:$0xff]  ;;  %p979_p6 = pnand %p978_p4, %p1170_p12  ;;  %s983_s29 = scalar_lea.vmem %s982_s23, 2048 }
  0x5b   : > { %797 = vmatpush3.bf16.msra.mxu0 %v904_v1  ;;  %835 = vmatpush3.bf16.msra.mxu1 %v904_v1  ;;  %p984_p10 = scmp.lt.s32.totalorder %s1287_s4, %s982_s23  ;;  %p985_p13 = scmp.lt.s32.totalorder %s983_s29, %s977_s27 }
  0x5c   : > { %798 = vmatprep.subr.bf16.mxu0 %v905_v2  ;;  %828 = vmatprep.subr.bf16.mxu1 %v905_v2  ;;  %p980_p8 = pneg %p979_p6 }
  0x5d   : > { %p986_p3 = por %p985_p13, %p984_p10 }
  0x5f   : > { %799 = vmatpush3.bf16.msra.mxu0 %v905_v2  ;;  %836 = vmatpush3.bf16.msra.mxu1 %v905_v2  ;;  %p987_p7 = pnand %p986_p3, %p980_p8 }
  0x60   : > { %800 = vmatprep.subr.bf16.mxu0 %v906_v3  ;;  %829 = vmatprep.subr.bf16.mxu1 %v906_v3 }
  0x63   : > { %801 = vmatpush3.bf16.msra.mxu0 %v906_v3  ;;  %837 = vmatpush3.bf16.msra.mxu1 %v906_v3 }
  0x64   : > { %802 = vmatprep.subr.bf16.mxu0 %v907_v6  ;;  %830 = vmatprep.subr.bf16.mxu1 %v907_v6 }
  0x67   : > { %803 = vmatpush3.bf16.msra.mxu0 %v907_v6  ;;  %838 = vmatpush3.bf16.msra.mxu1 %v907_v6 }
  0x68   : > { %804 = vmatprep.subr.bf16.mxu0 %v908_v7  ;;  %831 = vmatprep.subr.bf16.mxu1 %v908_v7 }
  0x6b   : > { %805 = vmatpush3.bf16.msra.mxu0 %v908_v7  ;;  %839 = vmatpush3.bf16.msra.mxu1 %v908_v7 }
  0x6c   : > { %806 = vmatprep.subr.bf16.mxu0 %v909_v8  ;;  %832 = vmatprep.subr.bf16.mxu1 %v909_v8 }
  0x6f   : > { %807 = vmatpush3.bf16.msra.mxu0 %v909_v8  ;;  %840 = vmatpush3.bf16.msra.mxu1 %v909_v8 }
  0x70   : > { %808 = vmatprep.subr.bf16.mxu0 %v910_v9  ;;  %833 = vmatprep.subr.bf16.mxu1 %v910_v9 }
  0x73   : > { %809 = vmatpush3.bf16.msra.mxu0 %v910_v9  ;;  %841 = vmatpush3.bf16.msra.mxu1 %v910_v9 }
  0x76   : > { %811 = vmatmul.mubr.bf16.vlgmr.msra.gmra.mrb[0].mxu0 %v913_v10  ;;  %819 = vmatmul.mubr.bf16.vlgmr.msra.gmra.mrb[0].mxu1 %v914_v11 }
  0x77   : > { %814 = vmatprep.mubr.bf16.mxu0 %v915_v12  ;;  %822 = vmatprep.mubr.bf16.mxu1 %v916_v13 }
  0x7e   : > { %815 = vmatmul.mubr.bf16.gmra.mrb[4].mxu0 %v917_v14  ;;  %823 = vmatmul.mubr.bf16.gmra.mrb[4].mxu1 %v918_v15 }
 0x149   : > { %v812_v17 = vpop.f32.mrb[0].mxu0  ;;  %v820_v18 = vpop.f32.mrb[0].mxu1 }
 0x14a   : > { %v385_v19 = vadd.f32 %v812_v17, %v1248_v16  ;;  %v417_v20 = vadd.f32 %v820_v18, %v1248_v16  ;;  %v376_v21 = vpop.f32.mrb[1].mxu0  ;;  %v408_v22 = vpop.f32.mrb[1].mxu1 }
 0x14b   : > { %v377_v23 = vadd.f32 %v1248_v16, %v376_v21  ;;  %v409_v24 = vadd.f32 %v1248_v16, %v408_v22  ;;  %v813_v25 = vpop.f32.mrb[2].mxu0  ;;  %v821_v26 = vpop.f32.mrb[2].mxu1 }
 0x14c   : > { %vm441_vm0 = vcmp.ge.f32.partialorder %v385_v19, 0.0  ;;  %v457_v27 = vmul.f32 0.01, %v385_v19  ;;  %vm449_vm1 = vcmp.ge.f32.partialorder %v417_v20, 0.0  ;;  %v465_v28 = vmul.f32 0.01, %v417_v20 }
 0x14d   : > { %vm439_vm2 = vcmp.ge.f32.partialorder %v377_v23, 0.0  ;;  %v455_v29 = vmul.f32 0.01, %v377_v23  ;;  %vm447_vm3 = vcmp.ge.f32.partialorder %v409_v24, 0.0  ;;  %v463_v30 = vmul.f32 0.01, %v409_v24 }
 0x14e   : > { %v388_v31 = vadd.f32 %v813_v25, %v1248_v16  ;;  %v420_v32 = vadd.f32 %v821_v26, %v1248_v16  ;;  %v379_v33 = vpop.f32.mrb[3].mxu0  ;;  %v411_v34 = vpop.f32.mrb[3].mxu1  ;;  %v473_v35 = vsel %vm441_vm0, %v385_v19, %v457_v27  ;;  %v481_v36 = vsel %vm449_vm1, %v417_v20, %v465_v28 }
 0x14f   : > { %v380_v37 = vadd.f32 %v1248_v16, %v379_v33  ;;  %v412_v38 = vadd.f32 %v1248_v16, %v411_v34  ;;  %v471_v43 = vsel %vm439_vm2, %v377_v23, %v455_v29  ;;  %v479_v44 = vsel %vm447_vm3, %v409_v24, %v463_v30 }
 0x150   : > { %vm442_vm4 = vcmp.ge.f32.partialorder %v388_v31, 0.0  ;;  %v458_v39 = vmul.f32 0.01, %v388_v31  ;;  %vm450_vm5 = vcmp.ge.f32.partialorder %v420_v32, 0.0  ;;  %v466_v40 = vmul.f32 0.01, %v420_v32 }
 0x151   : > { %vm440_vm6 = vcmp.ge.f32.partialorder %v380_v37, 0.0  ;;  %v456_v41 = vmul.f32 0.01, %v380_v37  ;;  %vm448_vm7 = vcmp.ge.f32.partialorder %v412_v38, 0.0  ;;  %v464_v42 = vmul.f32 0.01, %v412_v38 }
 0x152   : > { %v474_v45 = vsel %vm442_vm4, %v388_v31, %v458_v39  ;;  %v482_v46 = vsel %vm450_vm5, %v420_v32, %v466_v40  ;;  %v816_v47 = vpop.f32.mrb[4].mxu0  ;;  %v824_v48 = vpop.f32.mrb[4].mxu1 }
 0x153   : > { %v739_v49 = vpack.c.bf16 %v474_v45, %v473_v35  ;;  %v759_v50 = vpack.c.bf16 %v482_v46, %v481_v36  ;;  %v472_v51 = vsel %vm440_vm6, %v380_v37, %v456_v41  ;;  %v480_v52 = vsel %vm448_vm7, %v412_v38, %v464_v42  ;;  %v392_v53 = vpop.f32.mrb[5].mxu0  ;;  %v424_v54 = vpop.f32.mrb[5].mxu1 }
 0x154   : > { %v734_v55 = vpack.c.bf16 %v472_v51, %v471_v43  ;;  %v754_v56 = vpack.c.bf16 %v480_v52, %v479_v44  ;;  %v401_v57 = vadd.f32 %v816_v47, %v1248_v16  ;;  %v433_v58 = vadd.f32 %v824_v48, %v1248_v16  ;;  %v817_v59 = vpop.f32.mrb[6].mxu0  ;;  %v825_v60 = vpop.f32.mrb[6].mxu1 }
 0x155   : > { %771 = vst [vmem:[%s1264_s8 + $0x8] sm:$0xff] %v739_v49   ;;  %775 = vst [vmem:[%s1264_s8 + $0x28] sm:$0xff] %v759_v50   ;;  %v393_v61 = vadd.f32 %v1248_v16, %v392_v53  ;;  %v425_v62 = vadd.f32 %v1248_v16, %v424_v54  ;;  %v404_v63 = vadd.f32 %v817_v59, %v1248_v16  ;;  %v395_v1 = vpop.f32.mrb[7].mxu0  ;;  %v427_v2 = vpop.f32.mrb[7].mxu1 }
 0x156   : > { %v436_v0 = vadd.f32 %v825_v60, %v1248_v16  ;;  %735 = vst [vmem:[%s1264_s8] sm:$0xff] %v734_v55   ;;  %774 = vst [vmem:[%s1264_s8 + $0x20] sm:$0xff] %v754_v56   ;;  %v461_v3 = vmul.f32 0.01, %v401_v57  ;;  %vm445_vm8 = vcmp.ge.f32.partialorder %v401_v57, 0.0  ;;  %v469_v4 = vmul.f32 0.01, %v433_v58 }
 0x157   : > { %vm453_vm9 = vcmp.ge.f32.partialorder %v433_v58, 0.0  ;;  %vm443_vm10 = vcmp.ge.f32.partialorder %v393_v61, 0.0  ;;  %vm446_vm11 = vcmp.ge.f32.partialorder %v404_v63, 0.0  ;;  %v462_v5 = vmul.f32 0.01, %v404_v63 }
 0x158   : > { %v459_v6 = vmul.f32 0.01, %v393_v61  ;;  %vm451_vm12 = vcmp.ge.f32.partialorder %v425_v62, 0.0  ;;  %vm454_vm13 = vcmp.ge.f32.partialorder %v436_v0, 0.0  ;;  %v470_v7 = vmul.f32 0.01, %v436_v0 }
 0x159   : > { %v477_v8 = vsel %vm445_vm8, %v401_v57, %v461_v3  ;;  %v478_v9 = vsel %vm446_vm11, %v404_v63, %v462_v5  ;;  %v396_v10 = vadd.f32 %v1248_v16, %v395_v1  ;;  %v428_v11 = vadd.f32 %v1248_v16, %v427_v2 }
 0x15a   : > { %v485_v12 = vsel %vm453_vm9, %v433_v58, %v469_v4  ;;  %v467_v13 = vmul.f32 0.01, %v425_v62  ;;  %v749_v14 = vpack.c.bf16 %v478_v9, %v477_v8  ;;  %v486_v15 = vsel %vm454_vm13, %v436_v0, %v470_v7 }
 0x15b   : > { %v769_v17 = vpack.c.bf16 %v486_v15, %v485_v12  ;;  %vm444_vm14 = vcmp.ge.f32.partialorder %v396_v10, 0.0  ;;  %v460_v18 = vmul.f32 0.01, %v396_v10  ;;  %vm452_vm15 = vcmp.ge.f32.partialorder %v428_v11, 0.0 }
 0x15c   : > { %773 = vst [vmem:[%s1264_s8 + $0x18] sm:$0xff] %v749_v14   ;;  %v468_v19 = vmul.f32 0.01, %v428_v11  ;;  %v475_v20 = vsel %vm443_vm10, %v393_v61, %v459_v6  ;;  %v483_v21 = vsel %vm451_vm12, %v425_v62, %v467_v13 }
 0x15d   : > { %777 = vst [vmem:[%s1264_s8 + $0x38] sm:$0xff] %v769_v17   ;;  %v476_v16 = vsel %vm444_vm14, %v396_v10, %v460_v18 }
 0x15e   : > { %v744_v22 = vpack.c.bf16 %v476_v16, %v475_v20  ;;  %v484_v23 = vsel %vm452_vm15, %v428_v11, %v468_v19 }
 0x15f   : > { %v764_v24 = vpack.c.bf16 %v484_v23, %v483_v21 }
 0x160   : > { %772 = vst [vmem:[%s1264_s8 + $0x10] sm:$0xff] %v744_v22  }
 0x161   : > { %776 = vst [vmem:[%s1264_s8 + $0x30] sm:$0xff] %v764_v24  }
 0x162   : > { %990 = shalt.err (!%p987_p7)
}
 0x163   : > { %s991_s30 = scalar_lea.hbm %s1285_s11, 1024  ;;  %s995_s10 = scalar_lea.hbm %s1336_s3, 2048 }
 0x164   : > { %p992_p9 = scmp.ne.s32.totalorder %s1285_s11, %s991_s30  ;;  %p996_p5 = scmp.lt.u32.totalorder %s1285_s11, %s1336_s3 }
 0x165   : > { %p997_p11 = scmp.lt.u32.totalorder %s995_s10, %s991_s30  ;;  %p999_p4 = scmp.lt.u32.totalorder %s991_s30, %s1285_s11 }
 0x166   : > { %p993_p1 = pnand %p992_p9, %p1170_p12 }
 0x167   : > { %p998_p2 = por %p997_p11, %p996_p5 }
 0x168   : > { %p994_p0 = pneg %p993_p1 }
 0x169   : > { %p1000_p6 = por %p999_p4, %p998_p2 }
 0x16b   : > { %p1001_p8 = pnand %p1000_p6, %p994_p0 }
 0x16d   : > { %1004 = shalt.err (!%p1001_p8)
}
 0x16e   : > { %s1054_s20 = smov 64   ;;  %s1055_s8 = smov 4  }
 0x16f   : > { %848 = dma.vmem_to_hbm [thread:$0]  (%p1170_p12), %s1287_s4, 1024, %s1285_s11, %s568_s16, %s1054_s20, %s1054_s20, %s1055_s8  }
 0x170 PF: > { %s596_s9 = sand.u32 1, %s1035_s12   ;;  %p1351_p10 = scmp.ne.s32.totalorder %s1341_s19, 0 }
 0x171   : > { %p1352_p13 = scmp.ge.s32.totalorder %s1047_s15, 2  ;;  %s597_s25 = scalar_lea.sflag [#allocation4], %s596_s9 }
 0x173   : > { %p859_p3 = pnand %p1352_p13, %p1351_p10 }
 0x175   : > { %1030 = dma.done.wait (!%p859_p3), %s597_s25, 1024  }
 0x176   : > { %1032 = vsyncadd (!%p859_p3), %s597_s25, 4294966272  ;;  %p17_p7 = scmp.ge.s32.totalorder %s1132_s24, 4   ;;  %s1353_s12 = smov %s1039_s13 }
 0x177   : > { %s1354_s13 = smov %s1043_s14  ;;  %s1355_s14 = smov %s1166_s17 }
 0x178   : > { %s1356_s15 = smov %s1132_s24  ;;  %19 = sbr.rel (!%p17_p7) target bundleno = 6 (0x6), region = 81 }
 0x17f   :  { %602 = vsyncpa [#allocation3], 1 }
 0x180   :  { %604 = vsyncpa [#allocation3 + $0x1], 1 }
 0x181   :  { %605 = vsyncpa [#allocation6], 1 }
 0x182   :  { %606 = vsyncpa [#allocation4], 1 }
 0x183   :  { %608 = vsyncpa [#allocation4 + $0x1], 1 }

</bundles_post_ra>
